<compile_context>
chip_gen: v5e
topology: v5e:2x2
jax: 0.10.0
libtpu: 0.0.40
codegen_flags: <defaults>
</compile_context>

<pallas_src>
import math

import jax
import jax.numpy as jnp
from jax import lax
from jax.experimental import pallas as pl
from jax.experimental.pallas import tpu as pltpu


def _round_up(x, m):
    return ((x + m - 1) // m) * m


def _detect_num_cores():
    """Best-effort TensorCore count per chip (v7x / megacore -> 2); falls back to 1."""
    try:
        dev = jax.devices()[0]
    except Exception:
        return 1
    for attr in ("num_cores", "core_count"):
        v = getattr(dev, attr, None)
        if isinstance(v, int) and v >= 1:
            return min(int(v), 2)
    return 1


def _plan(num_samples, num_boxes, num_cores=1, *, lane_target=512,
          max_tile_rows=1024, vmem_budget_bytes=24 * 1024 * 1024):
    """Static tiling plan: fold k samples per row so the lane width W = k*D is dense."""
    D = num_boxes * 4
    if D >= lane_target:
        k = 1                                      # already lane-dense
    else:
        k_unit = 128 // math.gcd(D, 128)           # smallest k with (k*D) % 128 == 0
        if k_unit * D > 2 * lane_target:
            k = -(-lane_target // D)               # ceil; full-width block, still legal
        else:
            k = k_unit * max(1, lane_target // (k_unit * D))
    W = k * D
    # Folded rows needed to hold samples 0..S (the pair term reads one extra sample).
    rows = -(-(num_samples + 1) // k)
    # ~48 B per lane per row: double-buffered bf16 eps block + a handful of f32
    # full-tile temporaries the compiler may materialize.  Keeps v7x (64 MiB) safe.
    t_cap = max(8, (vmem_budget_bytes // (W * 48)) // 8 * 8)
    T = min(_round_up(rows, 8), _round_up(max_tile_rows, 8), t_cap)
    R = _round_up(rows, num_cores * T)
    Gp = R // (num_cores * T)                      # grid steps per section/core
    S_eps = R * k                                  # folded samples streamed
    return dict(D=D, k=k, W=W, T=T, R=R, Gp=Gp, C=num_cores, S_eps=S_eps)


def preferred_eps_samples(num_samples, num_boxes, num_cores=1, *,
                          lane_target=512, max_tile_rows=1024):
    """How many i.i.d. N(0,1) samples to pass so the wrapper needs no pad/copy."""
    return _plan(num_samples, num_boxes, num_cores, lane_target=lane_target,
                 max_tile_rows=max_tile_rows)['S_eps']


def _make_kernel(*, k, D, W, T, S, Gp, out_w):
    TK = T * k

    def kernel(sig_ref, ptd_ref, binit_ref, eps_ref, out_ref,
               acc1_ref, acc2_ref, carry_ref):
        c = pl.program_id(0)                      # section (TensorCore) index
        j = pl.program_id(1)                      # tile index within section
        tile = c * Gp + j                         # global tile index
        base = tile * TK                          # sample index of slot (row 0, group 0)

        @pl.when(j == 0)
        def _init():
            acc1_ref[...] = jnp.zeros_like(acc1_ref)
            acc2_ref[...] = jnp.zeros_like(acc2_ref)
            carry_ref[...] = binit_ref[...].astype(jnp.float32)

        sig = sig_ref[...]                                     # (1, W) sigma, lane-tiled
        ptd = ptd_ref[...]                                     # (1, W) pred - target
        e1 = eps_ref[...].astype(jnp.float32)                  # (T, W)
        row0 = eps_ref[pl.ds(0, 1), :].astype(jnp.float32)     # (1, W) first row
        rowL = eps_ref[pl.ds(T - 1, 1), :].astype(jnp.float32) # (1, W) last row
        carried = carry_ref[...]                               # prev tile's last row
        carry_ref[...] = rowL                                  # carry for the next tile

        # first term: |x[s] - target| = |eps*sigma + (pred - target)|
        a1 = jnp.abs(e1 * sig + ptd)

        # second term (backwards pairs): slot t = row*k + g holds |eps[t] - eps[t-1]|
        prow = pltpu.roll(e1, 1, 0)               # prow[r] = e1[r-1]  (wraps at r=0)
        if k > 1:
            lane_idx = lax.broadcasted_iota(jnp.int32, (T, W), 1)
            m = jnp.where(lane_idx >= (W - D), prow, e1)
            prev = pltpu.roll(m, D, 1)            # groups g>=1 <- same row g-1,
        else:                                     # group 0   <- prev row's last group
            prev = prow
        a2 = jnp.abs(e1 - prev)

        full_valid = (base + TK) <= S

        @pl.when(full_valid)
        def _acc_plain():
            acc1_ref[...] += jnp.sum(a1.reshape(T // 8, 8, W), axis=0)
            acc2_ref[...] += jnp.sum(a2.reshape(T // 8, 8, W), axis=0)

        @pl.when(base + TK > S)
        def _acc_masked():                        # tail / padded tiles only
            row_idx = lax.broadcasted_iota(jnp.int32, (T, W), 0)
            lanes = lax.broadcasted_iota(jnp.int32, (T, W), 1)
            b1 = (S - (tile * T + row_idx) * k) * D     # term 1 valid: sample < S
            v1 = lanes < b1
            v2 = lanes < (b1 + D)                       # term 2 valid: t <= S
            acc1_ref[...] += jnp.sum(
                jnp.where(v1, a1, 0.0).reshape(T // 8, 8, W), axis=0)
            acc2_ref[...] += jnp.sum(
                jnp.where(v2, a2, 0.0).reshape(T // 8, 8, W), axis=0)

        # Cross-tile boundary fix for slot (row 0, group 0): swap the in-tile wrap
        # value for the pair against the carried previous row.  Tiny (1, W) work.
        @pl.when(base <= S)
        def _fix():
            if k > 1:
                wrong_prev = pltpu.roll(rowL, D, 1)
                right_prev = pltpu.roll(carried, D, 1)
            else:
                wrong_prev = rowL
                right_prev = carried
            fix = jnp.abs(row0 - right_prev) - jnp.abs(row0 - wrong_prev)
            if k > 1:
                lane1 = lax.broadcasted_iota(jnp.int32, (1, W), 1)
                fix = jnp.where(lane1 < D, fix, 0.0)
            row8 = lax.broadcasted_iota(jnp.int32, (8, W), 0)
            acc2_ref[...] += jnp.where(row8 == 0, fix, 0.0)

        @pl.when(j == Gp - 1)
        def _finalize():
            s1 = jnp.sum(acc1_ref[...])
            s2 = jnp.sum(jnp.sum(acc2_ref[...], axis=0, keepdims=True) * sig)
            lane_o = lax.broadcasted_iota(jnp.int32, (1, out_w), 1)
            out_ref[...] = (jnp.where(lane_o == 0, s1, 0.0) +
                            jnp.where(lane_o == 1, s2, 0.0))

    return kernel


def es_loss(pred, pred_cov, target, eps, *, num_samples, reduction='mean',
            loss_weight=1.0, probabilistic_weight=1.0, attenuated=False,
            lane_target=512, max_tile_rows=1024, num_cores=None,
            return_parts=False):
    """Energy-score loss.

    pred / pred_cov / target: (N, 4).
    eps: i.i.d. N(0,1) noise, shape (S_eps, N, 4) with S_eps >= num_samples + 1;
         bfloat16 is recommended (the kernel upcasts in-VMEM; it halves HBM traffic).
         Use preferred_eps_samples(...) for the copy-free size.
    num_cores: sections run on separate TensorCores on v7x / megacore chips; on
         single-TC chips a value > 1 just runs sequentially (still correct).
    """
    assert reduction in ('mean', 'sum'), reduction
    # TODO(synk): reduction='none' (per-element (S*N, 4) output), the `weight`
    #             nonzero-mask filtering path (data-dependent shape) and
    #             `avg_factor` are not implemented.
    N = int(pred.shape[0])
    S = int(num_samples)
    if num_cores is None:
        num_cores = _detect_num_cores()
    num_cores = max(1, int(num_cores))
    if N == 0:
        z = loss_weight * jnp.sum(pred)
        return (z, z, z) if return_parts else z

    plan = _plan(S, N, num_cores, lane_target=lane_target, max_tile_rows=max_tile_rows)
    D, k, W, T, R, Gp, C, S_eps = (plan[x] for x in
                                   ('D', 'k', 'W', 'T', 'R', 'Gp', 'C', 'S_eps'))

    eps2d = eps.reshape(eps.shape[0], -1)
    assert eps2d.shape[1] == D, "eps must have N*4 values per sample"
    n_in = eps2d.shape[0]
    assert n_in >= S + 1, "need at least num_samples + 1 noise samples"
    if n_in < S_eps:
        # Padded samples are masked in-kernel, so their values are irrelevant.
        eps2d = jnp.concatenate(
            [eps2d, jnp.zeros((S_eps - n_in, D), eps2d.dtype)], axis=0)
    elif n_in > S_eps:
        eps2d = eps2d[:S_eps]
    eps_folded = eps2d.reshape(R, W)              # free, row-major fold: k samples / row

    pred32 = pred.astype(jnp.float32).reshape(1, D)
    tgt32 = target.astype(jnp.float32).reshape(1, D)
    sig32 = jnp.exp(0.5 * pred_cov.astype(jnp.float32)).reshape(1, D)
    sig_t = jnp.tile(sig32, (1, k))               # (1, W)
    ptd_t = jnp.tile(pred32 - tgt32, (1, k))      # (1, W)

    # Per-section boundary rows (tiny): the folded row just before each section;
    # section 0 gets a sentinel whose last group equals row 0's first group so the
    # non-existent pair for sample 0 contributes exactly zero.
    Rp = Gp * T
    b_rows = [jnp.roll(eps_folded[0:1, :], -D, axis=1)]
    for c in range(1, C):
        b_rows.append(eps_folded[c * Rp - 1:c * Rp, :])
    binit = jnp.concatenate(b_rows, axis=0) if C > 1 else b_rows[0]

    out_w = 128
    kernel = _make_kernel(k=k, D=D, W=W, T=T, S=S, Gp=Gp, out_w=out_w)

    out = pl.pallas_call(
        kernel,
        out_shape=jax.ShapeDtypeStruct((C, out_w), jnp.float32),
        grid_spec=pltpu.PrefetchScalarGridSpec(
            num_scalar_prefetch=0,
            grid=(C, Gp),
            in_specs=[
                pl.BlockSpec((1, W), lambda c, j: (0, 0)),            # sigma (lane-tiled)
                pl.BlockSpec((1, W), lambda c, j: (0, 0)),            # pred - target
                pl.BlockSpec((1, W), lambda c, j: (c, 0)),            # section boundary row
                pl.BlockSpec((T, W), lambda c, j: (c * Gp + j, 0)),   # eps tile
            ],
            out_specs=pl.BlockSpec((1, out_w), lambda c, j: (c, 0)),
            scratch_shapes=[pltpu.VMEM((8, W), jnp.float32),          # acc1
                            pltpu.VMEM((8, W), jnp.float32),          # acc2
                            pltpu.VMEM((1, W), jnp.float32)],         # boundary carry
        ),
        compiler_params=pltpu.CompilerParams(
            dimension_semantics=("parallel", "arbitrary"),
            vmem_limit_bytes=48 * 1024 * 1024),
    )(sig_t, ptd_t, binit, eps_folded)

    sum1 = jnp.sum(out[:, 0])
    sum2 = jnp.sum(out[:, 1])
    n_elems = S * N * 4
    if reduction == 'mean':
        first = sum1 / n_elems
        second = sum2 / n_elems
    else:  # 'sum'
        first = sum1
        second = sum2

    pw = probabilistic_weight if attenuated else 1.0
    loss = pw * (first - 0.5 * second) / S
    if attenuated and pw < 1.0:
        std = jnp.abs(pred32 - tgt32)
        std = jnp.mean(std) if reduction == 'mean' else jnp.sum(std)
        loss = loss + (1.0 - pw) * std
    loss = loss_weight * loss
    if return_parts:
        return loss, first, second
    return loss


def _reference(pred, pred_cov, target, eps, num_samples, reduction='mean',
               loss_weight=1.0, probabilistic_weight=1.0, attenuated=False):
    """Pure-JAX reference mirroring the PyTorch forward (weight/avg_factor = None)."""
    S = num_samples
    N = pred.shape[0]
    eps = eps.reshape(eps.shape[0], N, 4)[:S + 1].astype(jnp.float32)
    pred = pred.astype(jnp.float32)
    target = target.astype(jnp.float32)
    sigma = jnp.exp(0.5 * pred_cov.astype(jnp.float32))
    samples = pred[None] + eps * sigma[None]                  # (S+1, N, 4)
    s1 = samples[:-1].reshape(-1, 4)
    s2 = samples[1:].reshape(-1, 4)
    tgt = jnp.broadcast_to(target[None], (S, N, 4)).reshape(-1, 4)
    red = jnp.mean if reduction == 'mean' else jnp.sum
    first = red(jnp.abs(s1 - tgt))
    second = red(jnp.abs(s1 - s2))
    pw = probabilistic_weight if attenuated else 1.0
    loss = pw * (first - 0.5 * second) / S
    if attenuated and pw < 1.0:
        loss = loss + (1.0 - pw) * red(jnp.abs(pred - target))
    return loss_weight * loss, first, second


if __name__ == "__main__":
    key = jax.random.PRNGKey(0)

    # (num_boxes, num_samples, reduction, attenuated, prob_weight, max_tile_rows, cores)
    configs = [
        (8, 96, 'mean', False, 1.0, 1024, 1),   # single tile, masked tail samples
        (8, 1000, 'mean', False, 1.0, 16, 1),   # multi-tile, cross-tile carried boundary
        (5, 128, 'sum', True, 0.7, 1024, 1),    # non-pow2 box count, sum + attenuated
        (8, 1000, 'mean', False, 1.0, 16, 2),   # two sections (v7x 2-TensorCore layout)
        (8, 60, 'mean', False, 1.0, 1024, 2),   # second section entirely padding
    ]

    for (N, S, red, att, pw, mtr, nc) in configs:
        key, k1, k2, k3, k4 = jax.random.split(key, 5)
        pred = jax.random.normal(k1, (N, 4), dtype=jnp.float32)
        pred_cov = 0.5 * jax.random.normal(k2, (N, 4), dtype=jnp.float32)  # log variance
        target = jax.random.normal(k3, (N, 4), dtype=jnp.float32)
        n_eps = preferred_eps_samples(S, N, nc, max_tile_rows=mtr)
        # bf16 noise: halves the only large HBM stream; kernel accumulates in f32.
        eps = jax.random.normal(k4, (n_eps, N, 4), dtype=jnp.bfloat16)

        loss, first, second = es_loss(
            pred, pred_cov, target, eps, num_samples=S, reduction=red,
            attenuated=att, probabilistic_weight=pw, max_tile_rows=mtr,
            num_cores=nc, return_parts=True)
        loss = jax.block_until_ready(loss)

        ref_loss, ref_first, ref_second = _reference(
            pred, pred_cov, target, eps, S, reduction=red,
            attenuated=att, probabilistic_weight=pw)

        assert jnp.allclose(first, ref_first, rtol=2e-4, atol=1e-6), (first, ref_first)
        assert jnp.allclose(second, ref_second, rtol=2e-4, atol=1e-6), (second, ref_second)
        assert jnp.allclose(loss, ref_loss, rtol=1e-3, atol=1e-6), (loss, ref_loss)

    print("KERNEL_OK")
</pallas_src>

<mosaic_0001>
module attributes {stable_mosaic.version = 11 : i64} {
  func.func @kernel(%arg0: i32, %arg1: i32, %arg2: memref<1x512xf32, #tpu.memory_space<vmem>>, %arg3: memref<1x512xf32, #tpu.memory_space<vmem>>, %arg4: memref<1x512xbf16, #tpu.memory_space<vmem>>, %arg5: memref<8x512xbf16, #tpu.memory_space<vmem>>, %arg6: memref<1x128xf32, #tpu.memory_space<vmem>>, %arg7: memref<8x512xf32, #tpu.memory_space<vmem>>, %arg8: memref<8x512xf32, #tpu.memory_space<vmem>>, %arg9: memref<1x512xf32, #tpu.memory_space<vmem>>) attributes {dimension_semantics = [#tpu.dimension_semantics<parallel>, #tpu.dimension_semantics<arbitrary>], iteration_bounds = array<i64: 1, 1>, scalar_prefetch = 0 : i64, scratch_operands = 3 : i64, tpu.core_type = #tpu.core_type<tc>, window_params = [{pipeline_mode = #tpu.pipeline_mode<synchronous>, transform_indices = @transform_0, window_bounds = array<i64: 1, 512>}, {pipeline_mode = #tpu.pipeline_mode<synchronous>, transform_indices = @transform_1, window_bounds = array<i64: 1, 512>}, {transform_indices = @transform_2, window_bounds = array<i64: 1, 512>}, {transform_indices = @transform_3, window_bounds = array<i64: 8, 512>}, {transform_indices = @transform_4, window_bounds = array<i64: 1, 128>}]} {
    %c1_i32 = arith.constant 1 : i32
    %0 = arith.muli %arg0, %c1_i32 : i32
    %1 = arith.addi %0, %arg1 : i32
    %c128_i32 = arith.constant 128 : i32
    %2 = arith.muli %1, %c128_i32 : i32
    %c0_i32 = arith.constant 0 : i32
    %3 = arith.cmpi eq, %arg1, %c0_i32 : i32
    %4 = arith.extui %3 : i1 to i32
    %c0_i32_0 = arith.constant 0 : i32
    %5 = arith.cmpi ne, %4, %c0_i32_0 : i32
    scf.if %5 {
      %cst = arith.constant 0.000000e+00 : f32
      %43 = vector.broadcast %cst : f32 to vector<8x512xf32>
      %c0_23 = arith.constant 0 : index
      %c0_24 = arith.constant 0 : index
      %44 = vector.load %arg7[%c0_23, %c0_24] : memref<8x512xf32, #tpu.memory_space<vmem>>, vector<8x512xf32>
      tpu.vector_store %arg7[%c0_23, %c0_24], %43 {strides = array<i32>} : memref<8x512xf32, #tpu.memory_space<vmem>>, vector<8x512xf32>,
      %cst_25 = arith.constant 0.000000e+00 : f32
      %45 = vector.broadcast %cst_25 : f32 to vector<8x512xf32>
      %c0_26 = arith.constant 0 : index
      %c0_27 = arith.constant 0 : index
      %46 = vector.load %arg8[%c0_26, %c0_27] : memref<8x512xf32, #tpu.memory_space<vmem>>, vector<8x512xf32>
      tpu.vector_store %arg8[%c0_26, %c0_27], %45 {strides = array<i32>} : memref<8x512xf32, #tpu.memory_space<vmem>>, vector<8x512xf32>,
      %c0_28 = arith.constant 0 : index
      %c0_29 = arith.constant 0 : index
      %47 = vector.load %arg4[%c0_28, %c0_29] : memref<1x512xbf16, #tpu.memory_space<vmem>>, vector<1x512xbf16>
      %48 = arith.extf %47 : vector<1x512xbf16> to vector<1x512xf32>
      %c0_30 = arith.constant 0 : index
      %c0_31 = arith.constant 0 : index
      %49 = vector.load %arg9[%c0_30, %c0_31] : memref<1x512xf32, #tpu.memory_space<vmem>>, vector<1x512xf32>
      tpu.vector_store %arg9[%c0_30, %c0_31], %48 {strides = array<i32>} : memref<1x512xf32, #tpu.memory_space<vmem>>, vector<1x512xf32>,
    } else {
    }
    %c0 = arith.constant 0 : index
    %c0_1 = arith.constant 0 : index
    %6 = vector.load %arg2[%c0, %c0_1] : memref<1x512xf32, #tpu.memory_space<vmem>>, vector<1x512xf32>
    %c0_2 = arith.constant 0 : index
    %c0_3 = arith.constant 0 : index
    %7 = vector.load %arg3[%c0_2, %c0_3] : memref<1x512xf32, #tpu.memory_space<vmem>>, vector<1x512xf32>
    %c0_4 = arith.constant 0 : index
    %c0_5 = arith.constant 0 : index
    %8 = vector.load %arg5[%c0_4, %c0_5] : memref<8x512xbf16, #tpu.memory_space<vmem>>, vector<8x512xbf16>
    %9 = arith.extf %8 : vector<8x512xbf16> to vector<8x512xf32>
    %c0_6 = arith.constant 0 : index
    %c0_7 = arith.constant 0 : index
    %10 = vector.load %arg5[%c0_6, %c0_7] : memref<8x512xbf16, #tpu.memory_space<vmem>>, vector<1x512xbf16>
    %11 = arith.extf %10 : vector<1x512xbf16> to vector<1x512xf32>
    %c7 = arith.constant 7 : index
    %c0_8 = arith.constant 0 : index
    %12 = vector.load %arg5[%c7, %c0_8] : memref<8x512xbf16, #tpu.memory_space<vmem>>, vector<1x512xbf16>
    %13 = arith.extf %12 : vector<1x512xbf16> to vector<1x512xf32>
    %c0_9 = arith.constant 0 : index
    %c0_10 = arith.constant 0 : index
    %14 = vector.load %arg9[%c0_9, %c0_10] : memref<1x512xf32, #tpu.memory_space<vmem>>, vector<1x512xf32>
    %c0_11 = arith.constant 0 : index
    %c0_12 = arith.constant 0 : index
    %15 = vector.load %arg9[%c0_11, %c0_12] : memref<1x512xf32, #tpu.memory_space<vmem>>, vector<1x512xf32>
    tpu.vector_store %arg9[%c0_11, %c0_12], %13 {strides = array<i32>} : memref<1x512xf32, #tpu.memory_space<vmem>>, vector<1x512xf32>,
    %16 = vector.broadcast %6 : vector<1x512xf32> to vector<8x512xf32>
    %17 = arith.mulf %9, %16 : vector<8x512xf32>
    %18 = vector.broadcast %7 : vector<1x512xf32> to vector<8x512xf32>
    %19 = arith.addf %17, %18 : vector<8x512xf32>
    %20 = math.absf %19 : vector<8x512xf32>
    %c1_i32_13 = arith.constant 1 : i32
    %21 = tpu.dynamic_rotate %9 by %c1_i32_13 dim 0 : vector<8x512xf32>, i32 -> vector<8x512xf32>
    %22 = tpu.iota {dimensions = array<i32: 1>} : vector<8x512xi32>
    %c480_i32 = arith.constant 480 : i32
    %23 = vector.broadcast %c480_i32 : i32 to vector<8x512xi32>
    %24 = arith.cmpi sge, %22, %23 : vector<8x512xi32>
    %25 = arith.select %24, %21, %9 : vector<8x512xi1>, vector<8x512xf32>
    %c32_i32 = arith.constant 32 : i32
    %26 = tpu.dynamic_rotate %25 by %c32_i32 dim 1 : vector<8x512xf32>, i32 -> vector<8x512xf32>
    %27 = arith.subf %9, %26 : vector<8x512xf32>
    %28 = math.absf %27 : vector<8x512xf32>
    %c128_i32_14 = arith.constant 128 : i32
    %29 = arith.addi %2, %c128_i32_14 : i32
    %c96_i32 = arith.constant 96 : i32
    %30 = arith.cmpi sle, %29, %c96_i32 : i32
    %31 = arith.extui %30 : i1 to i32
    %c0_i32_15 = arith.constant 0 : i32
    %32 = arith.cmpi ne, %31, %c0_i32_15 : i32
    scf.if %32 {
      %c0_23 = arith.constant 0 : index
      %c0_24 = arith.constant 0 : index
      %43 = vector.load %arg7[%c0_23, %c0_24] : memref<8x512xf32, #tpu.memory_space<vmem>>, vector<8x512xf32>
      %44 = vector.shape_cast %20 : vector<8x512xf32> to vector<1x8x512xf32>
      %cst = arith.constant dense<0.000000e+00> : vector<8x512xf32>
      %45 = vector.multi_reduction <add>, %44, %cst [0] : vector<1x8x512xf32> to vector<8x512xf32>
      %46 = arith.addf %43, %45 : vector<8x512xf32>
      %c0_25 = arith.constant 0 : index
      %c0_26 = arith.constant 0 : index
      %47 = vector.load %arg7[%c0_25, %c0_26] : memref<8x512xf32, #tpu.memory_space<vmem>>, vector<8x512xf32>
      tpu.vector_store %arg7[%c0_25, %c0_26], %46 {strides = array<i32>} : memref<8x512xf32, #tpu.memory_space<vmem>>, vector<8x512xf32>,
      %c0_27 = arith.constant 0 : index
      %c0_28 = arith.constant 0 : index
      %48 = vector.load %arg8[%c0_27, %c0_28] : memref<8x512xf32, #tpu.memory_space<vmem>>, vector<8x512xf32>
      %49 = vector.shape_cast %28 : vector<8x512xf32> to vector<1x8x512xf32>
      %cst_29 = arith.constant dense<0.000000e+00> : vector<8x512xf32>
      %50 = vector.multi_reduction <add>, %49, %cst_29 [0] : vector<1x8x512xf32> to vector<8x512xf32>
      %51 = arith.addf %48, %50 : vector<8x512xf32>
      %c0_30 = arith.constant 0 : index
      %c0_31 = arith.constant 0 : index
      %52 = vector.load %arg8[%c0_30, %c0_31] : memref<8x512xf32, #tpu.memory_space<vmem>>, vector<8x512xf32>
      tpu.vector_store %arg8[%c0_30, %c0_31], %51 {strides = array<i32>} : memref<8x512xf32, #tpu.memory_space<vmem>>, vector<8x512xf32>,
    } else {
    }
    %c128_i32_16 = arith.constant 128 : i32
    %33 = arith.addi %2, %c128_i32_16 : i32
    %c96_i32_17 = arith.constant 96 : i32
    %34 = arith.cmpi sgt, %33, %c96_i32_17 : i32
    %35 = arith.extui %34 : i1 to i32
    %c0_i32_18 = arith.constant 0 : i32
    %36 = arith.cmpi ne, %35, %c0_i32_18 : i32
    scf.if %36 {
      %43 = tpu.iota {dimensions = array<i32: 0>} : vector<8x512xi32>
      %44 = tpu.iota {dimensions = array<i32: 1>} : vector<8x512xi32>
      %c8_i32 = arith.constant 8 : i32
      %45 = arith.muli %1, %c8_i32 : i32
      %46 = vector.broadcast %45 : i32 to vector<8x512xi32>
      %47 = arith.addi %46, %43 : vector<8x512xi32>
      %c16_i32 = arith.constant 16 : i32
      %48 = vector.broadcast %c16_i32 : i32 to vector<8x512xi32>
      %49 = arith.muli %47, %48 : vector<8x512xi32>
      %c96_i32_23 = arith.constant 96 : i32
      %50 = vector.broadcast %c96_i32_23 : i32 to vector<8x512xi32>
      %51 = arith.subi %50, %49 : vector<8x512xi32>
      %c32_i32_24 = arith.constant 32 : i32
      %52 = vector.broadcast %c32_i32_24 : i32 to vector<8x512xi32>
      %53 = arith.muli %51, %52 : vector<8x512xi32>
      %54 = arith.cmpi slt, %44, %53 : vector<8x512xi32>
      %c32_i32_25 = arith.constant 32 : i32
      %55 = vector.broadcast %c32_i32_25 : i32 to vector<8x512xi32>
      %56 = arith.addi %53, %55 : vector<8x512xi32>
      %57 = arith.cmpi slt, %44, %56 : vector<8x512xi32>
      %c0_26 = arith.constant 0 : index
      %c0_27 = arith.constant 0 : index
      %58 = vector.load %arg7[%c0_26, %c0_27] : memref<8x512xf32, #tpu.memory_space<vmem>>, vector<8x512xf32>
      %cst = arith.constant 0.000000e+00 : f32
      %59 = vector.broadcast %cst : f32 to vector<8x512xf32>
      %60 = arith.select %54, %20, %59 : vector<8x512xi1>, vector<8x512xf32>
      %61 = vector.shape_cast %60 : vector<8x512xf32> to vector<1x8x512xf32>
      %cst_28 = arith.constant dense<0.000000e+00> : vector<8x512xf32>
      %62 = vector.multi_reduction <add>, %61, %cst_28 [0] : vector<1x8x512xf32> to vector<8x512xf32>
      %63 = arith.addf %58, %62 : vector<8x512xf32>
      %c0_29 = arith.constant 0 : index
      %c0_30 = arith.constant 0 : index
      %64 = vector.load %arg7[%c0_29, %c0_30] : memref<8x512xf32, #tpu.memory_space<vmem>>, vector<8x512xf32>
      tpu.vector_store %arg7[%c0_29, %c0_30], %63 {strides = array<i32>} : memref<8x512xf32, #tpu.memory_space<vmem>>, vector<8x512xf32>,
      %c0_31 = arith.constant 0 : index
      %c0_32 = arith.constant 0 : index
      %65 = vector.load %arg8[%c0_31, %c0_32] : memref<8x512xf32, #tpu.memory_space<vmem>>, vector<8x512xf32>
      %cst_33 = arith.constant 0.000000e+00 : f32
      %66 = vector.broadcast %cst_33 : f32 to vector<8x512xf32>
      %67 = arith.select %57, %28, %66 : vector<8x512xi1>, vector<8x512xf32>
      %68 = vector.shape_cast %67 : vector<8x512xf32> to vector<1x8x512xf32>
      %cst_34 = arith.constant dense<0.000000e+00> : vector<8x512xf32>
      %69 = vector.multi_reduction <add>, %68, %cst_34 [0] : vector<1x8x512xf32> to vector<8x512xf32>
      %70 = arith.addf %65, %69 : vector<8x512xf32>
      %c0_35 = arith.constant 0 : index
      %c0_36 = arith.constant 0 : index
      %71 = vector.load %arg8[%c0_35, %c0_36] : memref<8x512xf32, #tpu.memory_space<vmem>>, vector<8x512xf32>
      tpu.vector_store %arg8[%c0_35, %c0_36], %70 {strides = array<i32>} : memref<8x512xf32, #tpu.memory_space<vmem>>, vector<8x512xf32>,
    } else {
    }
    %c96_i32_19 = arith.constant 96 : i32
    %37 = arith.cmpi sle, %2, %c96_i32_19 : i32
    %38 = arith.extui %37 : i1 to i32
    %c0_i32_20 = arith.constant 0 : i32
    %39 = arith.cmpi ne, %38, %c0_i32_20 : i32
    scf.if %39 {
      %c32_i32_23 = arith.constant 32 : i32
      %43 = tpu.dynamic_rotate %13 by %c32_i32_23 dim 1 : vector<1x512xf32>, i32 -> vector<1x512xf32>
      %c32_i32_24 = arith.constant 32 : i32
      %44 = tpu.dynamic_rotate %14 by %c32_i32_24 dim 1 : vector<1x512xf32>, i32 -> vector<1x512xf32>
      %45 = arith.subf %11, %44 : vector<1x512xf32>
      %46 = math.absf %45 : vector<1x512xf32>
      %47 = arith.subf %11, %43 : vector<1x512xf32>
      %48 = math.absf %47 : vector<1x512xf32>
      %49 = arith.subf %46, %48 : vector<1x512xf32>
      %50 = tpu.iota {dimensions = array<i32: 1>} : vector<1x512xi32>
      %c32_i32_25 = arith.constant 32 : i32
      %51 = vector.broadcast %c32_i32_25 : i32 to vector<1x512xi32>
      %52 = arith.cmpi slt, %50, %51 : vector<1x512xi32>
      %cst = arith.constant 0.000000e+00 : f32
      %53 = vector.broadcast %cst : f32 to vector<1x512xf32>
      %54 = arith.select %52, %49, %53 : vector<1x512xi1>, vector<1x512xf32>
      %55 = tpu.iota {dimensions = array<i32: 0>} : vector<8x512xi32>
      %c0_26 = arith.constant 0 : index
      %c0_27 = arith.constant 0 : index
      %56 = vector.load %arg8[%c0_26, %c0_27] : memref<8x512xf32, #tpu.memory_space<vmem>>, vector<8x512xf32>
      %c0_i32_28 = arith.constant 0 : i32
      %57 = vector.broadcast %c0_i32_28 : i32 to vector<8x512xi32>
      %58 = arith.cmpi eq, %55, %57 : vector<8x512xi32>
      %cst_29 = arith.constant 0.000000e+00 : f32
      %59 = vector.shape_cast %54 : vector<1x512xf32> to vector<1x512xf32>
      %60 = vector.broadcast %59 : vector<1x512xf32> to vector<8x512xf32>
      %61 = vector.broadcast %cst_29 : f32 to vector<8x512xf32>
      %62 = arith.select %58, %60, %61 : vector<8x512xi1>, vector<8x512xf32>
      %63 = arith.addf %56, %62 : vector<8x512xf32>
      %c0_30 = arith.constant 0 : index
      %c0_31 = arith.constant 0 : index
      %64 = vector.load %arg8[%c0_30, %c0_31] : memref<8x512xf32, #tpu.memory_space<vmem>>, vector<8x512xf32>
      tpu.vector_store %arg8[%c0_30, %c0_31], %63 {strides = array<i32>} : memref<8x512xf32, #tpu.memory_space<vmem>>, vector<8x512xf32>,
    } else {
    }
    %c0_i32_21 = arith.constant 0 : i32
    %40 = arith.cmpi eq, %arg1, %c0_i32_21 : i32
    %41 = arith.extui %40 : i1 to i32
    %c0_i32_22 = arith.constant 0 : i32
    %42 = arith.cmpi ne, %41, %c0_i32_22 : i32
    scf.if %42 {
      %c0_23 = arith.constant 0 : index
      %c0_24 = arith.constant 0 : index
      %43 = vector.load %arg7[%c0_23, %c0_24] : memref<8x512xf32, #tpu.memory_space<vmem>>, vector<8x512xf32>
      %44 = vector.shape_cast %43 : vector<8x512xf32> to vector<1x8x512xf32>
      %cst = arith.constant dense<0.000000e+00> : vector<1xf32>
      %45 = vector.multi_reduction <add>, %44, %cst [1, 2] : vector<1x8x512xf32> to vector<1xf32>
      %46 = vector.shape_cast %45 : vector<1xf32> to vector<1x1x1xf32>
      %47 = vector.extract %46[0, 0, 0] : f32 from vector<1x1x1xf32>
      %c0_25 = arith.constant 0 : index
      %c0_26 = arith.constant 0 : index
      %48 = vector.load %arg8[%c0_25, %c0_26] : memref<8x512xf32, #tpu.memory_space<vmem>>, vector<8x512xf32>
      %cst_27 = arith.constant dense<0.000000e+00> : vector<512xf32>
      %49 = vector.multi_reduction <add>, %48, %cst_27 [0] : vector<8x512xf32> to vector<512xf32>
      %50 = vector.shape_cast %49 : vector<512xf32> to vector<1x512xf32>
      %51 = arith.mulf %50, %6 : vector<1x512xf32>
      %52 = vector.shape_cast %51 : vector<1x512xf32> to vector<1x1x512xf32>
      %cst_28 = arith.constant dense<0.000000e+00> : vector<1xf32>
      %53 = vector.multi_reduction <add>, %52, %cst_28 [1, 2] : vector<1x1x512xf32> to vector<1xf32>
      %54 = vector.shape_cast %53 : vector<1xf32> to vector<1x1x1xf32>
      %55 = vector.extract %54[0, 0, 0] : f32 from vector<1x1x1xf32>
      %56 = tpu.iota {dimensions = array<i32: 1>} : vector<1x128xi32>
      %c0_i32_29 = arith.constant 0 : i32
      %57 = vector.broadcast %c0_i32_29 : i32 to vector<1x128xi32>
      %58 = arith.cmpi eq, %56, %57 : vector<1x128xi32>
      %cst_30 = arith.constant 0.000000e+00 : f32
      %59 = vector.broadcast %47 : f32 to vector<1x128xf32>
      %60 = vector.broadcast %cst_30 : f32 to vector<1x128xf32>
      %61 = arith.select %58, %59, %60 : vector<1x128xi1>, vector<1x128xf32>
      %c1_i32_31 = arith.constant 1 : i32
      %62 = vector.broadcast %c1_i32_31 : i32 to vector<1x128xi32>
      %63 = arith.cmpi eq, %56, %62 : vector<1x128xi32>
      %cst_32 = arith.constant 0.000000e+00 : f32
      %64 = vector.broadcast %55 : f32 to vector<1x128xf32>
      %65 = vector.broadcast %cst_32 : f32 to vector<1x128xf32>
      %66 = arith.select %63, %64, %65 : vector<1x128xi1>, vector<1x128xf32>
      %67 = arith.addf %61, %66 : vector<1x128xf32>
      %c0_33 = arith.constant 0 : index
      %c0_34 = arith.constant 0 : index
      %68 = vector.load %arg6[%c0_33, %c0_34] : memref<1x128xf32, #tpu.memory_space<vmem>>, vector<1x128xf32>
      tpu.vector_store %arg6[%c0_33, %c0_34], %67 {strides = array<i32>} : memref<1x128xf32, #tpu.memory_space<vmem>>, vector<1x128xf32>,
    } else {
    }
    return
  }
  func.func @transform_0(%arg0: i32, %arg1: i32) -> (i32, i32) {
    %c0_i32 = arith.constant 0 : i32
    %c0_i32_0 = arith.constant 0 : i32
    %c0_i32_1 = arith.constant 0 : i32
    return %c0_i32, %c0_i32_0 : i32, i32
  }
  func.func @transform_1(%arg0: i32, %arg1: i32) -> (i32, i32) {
    %c0_i32 = arith.constant 0 : i32
    %c0_i32_0 = arith.constant 0 : i32
    %c0_i32_1 = arith.constant 0 : i32
    return %c0_i32, %c0_i32_0 : i32, i32
  }
  func.func @transform_2(%arg0: i32, %arg1: i32) -> (i32, i32) {
    %c0_i32 = arith.constant 0 : i32
    %c0_i32_0 = arith.constant 0 : i32
    return %arg0, %c0_i32 : i32, i32
  }
  func.func @transform_3(%arg0: i32, %arg1: i32) -> (i32, i32) {
    %c1_i32 = arith.constant 1 : i32
    %0 = arith.muli %arg0, %c1_i32 : i32
    %1 = arith.addi %0, %arg1 : i32
    %c0_i32 = arith.constant 0 : i32
    %c0_i32_0 = arith.constant 0 : i32
    return %1, %c0_i32 : i32, i32
  }
  func.func @transform_4(%arg0: i32, %arg1: i32) -> (i32, i32) {
    %c0_i32 = arith.constant 0 : i32
    %c0_i32_0 = arith.constant 0 : i32
    return %arg0, %c0_i32 : i32, i32
  }
}

</mosaic_0001>

<bundles_post_ra>
// kernel: tpu_custom_call.1
= control target key start
LH: loop header
LB: loop body
LE: loop exit
PB: predicated region body
PF: predicated region fallthrough
CT: control target
= control target key end

     0   :  { %9 = vsyncpa [#allocation6], 0  ;;  %s817_s0 = inlined_call_operand.hbm [shape: f32[1,512], index: 0, kind: input, shape index: {}]   ;;  %s818_s1 = inlined_call_operand.hbm [shape: f32[1,512], index: 1, kind: input, shape index: {}]   ;;  %s819_s2 = inlined_call_operand.hbm [shape: bf16[1,512], index: 2, kind: input, shape index: {}]   ;;  %s820_s3 = inlined_call_operand.hbm [shape: bf16[8,512], index: 3, kind: input, shape index: {}]   ;;  %s821_s4 = inlined_call_operand.hbm [shape: f32[1,128], index: 4, kind: output, shape index: {}]  }
   0x1   :  { %10 = vsyncpa [#allocation9], 0 }
   0x2   :  { %11 = vsyncpa [#allocation12], 0  ;;  %s29_s17 = sshll.u32 %s818_s1, 4  ;;  %s30_s17 = int_to_ptr.hbm [resolvable:$true] %s29_s17 }
   0x3   :  { %12 = vsyncpa [#allocation7], 0  ;;  %s657_s18 = smov [#allocation8]   ;;  %s18_s22 = sshll.u32 %s817_s0, 4  ;;  %s19_s22 = int_to_ptr.hbm [resolvable:$true] %s18_s22 }
   0x4   :  { %s31_s19 = sshll.u32 %s657_s18, 4  ;;  %s658_s23 = smov [#allocation5]   ;;  %s32_s19 = int_to_ptr.vmem [resolvable:$true] %s31_s19 }
   0x5   :  { %34 = dma.hbm_to_vmem [thread:$0]  %s30_s17, 64, %s32_s19, [#allocation9]  }
   0x6   :  { %s20_s24 = sshll.u32 %s658_s23, 4  ;;  %s40_s27 = sshll.u32 %s819_s2, 4  ;;  %s21_s24 = int_to_ptr.vmem [resolvable:$true] %s20_s24  ;;  %s41_s27 = int_to_ptr.hbm [resolvable:$true] %s40_s27 }
   0x7   :  { %23 = dma.hbm_to_vmem [thread:$0]  %s19_s22, 64, %s21_s24, [#allocation6]  }
   0x8   :  { %s55_s29 = sshll.u32 %s820_s3, 4  ;;  %s659_s30 = smov [#allocation10]   ;;  %s56_s29 = int_to_ptr.hbm [resolvable:$true] %s55_s29 }
   0x9   :  { %s42_s5 = sshll.u32 %s659_s30, 4  ;;  %s660_s0 = smov [#allocation11]   ;;  %s43_s5 = int_to_ptr.vmem [resolvable:$true] %s42_s5 }
   0xa   :  { %45 = dma.hbm_to_vmem [thread:$0]  %s41_s27, 64, %s43_s5, [#allocation9]  }
   0xb   :  { %s57_s6 = sshll.u32 %s660_s0, 4  ;;  %s58_s6 = int_to_ptr.vmem [resolvable:$true] %s57_s6 }
   0xc   :  { %60 = dma.hbm_to_vmem [thread:$0]  %s56_s29, 256, %s58_s6, [#allocation12]  }
   0xd   :  { %649 = dma.done.wait [#allocation6], 64  }
   0xe   :  { %650 = vsyncadd [#allocation6], 4294967232 }
   0xf   :  { %651 = dma.done.wait [#allocation9], 128  }
  0x10   :  { %652 = vsyncadd [#allocation9], 4294967168 }
  0x11   :  { %653 = dma.done.wait [#allocation12], 256  }
  0x12   :  { %654 = vsyncadd [#allocation12], 4294967040  ;;  %v105_v0 = vlaneseq  ;;  %v124_v3 = vld [vmem:[#allocation11] sm:$0x88]  ;;  %v125_v4 = vld [vmem:[#allocation11 + $0x8] sm:$0x88] }
  0x13   :  { %v92_v5 = vld [vmem:[#allocation10] sm:$0xf]  ;;  %v126_v6 = vunpack.c.l.bf16 %v124_v3  ;;  %v127_v7 = vunpack.c.h.bf16 %v124_v3  ;;  %v128_v8 = vunpack.c.l.bf16 %v125_v4  ;;  %v129_v9 = vunpack.c.h.bf16 %v125_v4  ;;  %v113_v10 = vld [vmem:[#allocation11 + $0x8] sm:$0xff]  ;;  %s661_s2 = smov 32   ;;  %v112_v29 = vld [vmem:[#allocation11] sm:$0xff]  ;;  %s663_s7 = smov [#allocation13]  }
  0x14   :  { %v701_v1 = vand.u32 127, %v105_v0  ;;  %v93_v11 = vunpack.c.l.bf16 %v92_v5  ;;  %vm98_vm0 = vcmask 1040384   ;;  %vm100_vm1 = vcmask 1042434   ;;  %v118_v41 = vld [vmem:[#allocation11] sm:$0x1]  ;;  %s489_s8 = sshll.u32 %s663_s7, 4  ;;  %s490_s8 = int_to_ptr.vmem [resolvable:$true] %s489_s8 }
  0x15   :  { %vm102_vm2 = vcmask 1041408   ;;  %136 = vst [vmem:[#allocation1 + $0x9] sm:$0xff] %v127_v7  ;;  %v317_v12 = vrot.slane %v126_v6, 7  ;;  %v320_v13 = vrot.slane %v129_v9, 7  ;;  %v706_v14 = vunpack.c.h.bf16 %v113_v10  ;;  %v740_v42 = vld [vmem:[#allocation5] sm:$0xf] }
  0x16   :  { %v704_v2 = vadd.s32 384, %v701_v1  ;;  %137 = vst [vmem:[#allocation1 + $0x12] sm:$0xff] %v128_v8  ;;  %v95_v15 = vrot.slane %v93_v11, 1  ;;  %v96_v16 = vrot.slane %v93_v11, 2  ;;  %v97_v17 = vrot.slane %v93_v11, 3  ;;  %s491_s12 = sshll.u32 %s821_s4, 4  ;;  %s492_s12 = int_to_ptr.hbm [resolvable:$true] %s491_s12 }
  0x17   :  { %v709_v18 = vunpack.c.l.bf16 %v113_v10  ;;  %138 = vst [vmem:[#allocation1 + $0x1b] sm:$0xff] %v129_v9  ;;  %v514_v19 = vpack.i.bf16 %v320_v13, %v317_v12  ;;  %vm711_vm4 = vcmp.lt.s32.totalorder %v105_v0, 512  ;;  %v180_v21 = vrot.slane %v706_v14, 7  ;;  %v111_v48 = vld [vmem:[#allocation8] sm:$0xf] }
  0x18   :  { %vm189_vm3 = vcmp.ge.s32.totalorder %v704_v2, 480  ;;  %135 = vst [vmem:[#allocation1] sm:$0xff] %v126_v6  ;;  %v99_v22 = vsel %vm98_vm0, %v93_v11, %v95_v15  ;;  %v101_v23 = vsel %vm100_vm1, %v96_v16, %v97_v17  ;;  %v727_v32 = vunpack.c.l.bf16 %v112_v29 }
  0x19   :  { %515 = vrot.lane.b32.xlu0 %v514_v19, %s661_s2  ;;  %v103_v24 = vsel %vm102_vm2, %v99_v22, %v101_v23  ;;  %v193_v25 = vsel %vm189_vm3, %v180_v21, %v706_v14  ;;  %v729_v33 = vunpack.c.h.bf16 %v112_v29  ;;  %v733_v35 = vshrl.u32 %v105_v0, 7 }
  0x1a   :  { %109 = vst.msk [vmem:[#allocation4] sm:$0xf] %vm711_vm4, %v103_v24  ;;  %v524_v26 = vpack.i.bf16 %v709_v18, %v193_v25  ;;  %vm202_vm5 = vcmp.lt.s32.totalorder %v701_v1, 32  ;;  %v148_v43 = vperm.slane %v740_v42, 0  ;;  %v149_v44 = vperm.slane %v740_v42, 1 }
  0x1b   :  { %v519_v34 = vpack.i.bf16 %v729_v33, %v727_v32  ;;  %v261_v36 = vmul.u32 16, %v733_v35  ;;  %v120_v45 = vunpack.c.l.bf16 %v118_v41  ;;  %v150_v50 = vperm.slane %v740_v42, 2 }
  0x1c   :  { %525 = vrot.lane.b32.xlu2 %v524_v26, %s661_s2  ;;  %v156_v51 = vmul.f32 %v148_v43, %v727_v32  ;;  %v157_v52 = vmul.f32 %v149_v44, %v729_v33  ;;  %v161_v53 = vperm.slane %v111_v48, 0  ;;  %v759_v56 = vadd.s32 128, %v701_v1 }
  0x1d   :  { %v262_v38 = vsub.s32 96, %v261_v36  ;;  %v162_v57 = vperm.slane %v111_v48, 1  ;;  %v151_v58 = vperm.slane %v740_v42, 3  ;;  %v158_v59 = vmul.f32 %v150_v50, %v709_v18 }
  0x1e   :  { %v163_v60 = vperm.slane %v111_v48, 2  ;;  %v164_v61 = vperm.slane %v111_v48, 3  ;;  %v169_v62 = vadd.f32 %v161_v53, %v156_v51  ;;  %v184_v0 = vadd.s32 256, %v701_v1 }
  0x1f   :  { %v140_v27 = vld [vmem:[#allocation1 + $0x7] ss:$9 sm:$0xff]  ;;  %v263_v46 = vmul.u32 32, %v262_v38  ;;  %v170_v63 = vadd.f32 %v162_v57, %v157_v52  ;;  %v159_v3 = vmul.f32 %v151_v58, %v706_v14  ;;  %v662_v20 = vmov 0.0  }
  0x20   :  { %v171_v4 = vadd.f32 %v163_v60, %v158_v59  ;;  %v173_v6 = vand.u32 2147483647, %v169_v62  ;;  %v393_v21 = vperm.slane %v662_v20, 0  ;;  %vm391_vm10 = vcmp.eq.s32.totalorder %v733_v35, 0 }
  0x21   :  { %v130_v28 = vld [vmem:[#allocation4] sm:$0xf]  ;;  %vm264_vm6 = vcmp.lt.s32.totalorder %v701_v1, %v263_v46  ;;  %vm265_vm7 = vcmp.lt.s32.totalorder %v759_v56, %v263_v46  ;;  %v174_v7 = vand.u32 2147483647, %v170_v63  ;;  %vm266_vm8 = vcmp.lt.s32.totalorder %v184_v0, %v263_v46 }
  0x22   :  { %v341_v30 = vperm.slane %v130_v28, 3  ;;  %146 = vst.msk [vmem:[#allocation4] sm:$0xf] %vm711_vm4, %v140_v27  ;;  %v338_v31 = vperm.slane %v130_v28, 0  ;;  %v268_v9 = vadd.s32 32, %v263_v46  ;;  %v172_v10 = vadd.f32 %v164_v61, %v159_v3 }
  0x23   :  { %v175_v11 = vand.u32 2147483647, %v171_v4  ;;  %vm267_vm9 = vcmp.lt.s32.totalorder %v704_v2, %v263_v46  ;;  %v277_v12 = vsel %vm264_vm6, %v173_v6, 0.0  ;;  %v278_v13 = vsel %vm265_vm7, %v174_v7, 0.0 }
  0x24   :  { %352 = vrot.lane.b32.xlu1 %v341_v30, %s661_s2  ;;  %346 = vrot.lane.b32.xlu0 %v338_v31, %s661_s2  ;;  %v176_v15 = vand.u32 2147483647, %v172_v10  ;;  %v415_v17 = vadd.f32 %v278_v13, %v277_v12  ;;  %vm272_vm11 = vcmp.lt.s32.totalorder %v704_v2, %v268_v9  ;;  %v397_v29 = vsel %vm391_vm10, %v393_v21, 0.0 }
  0x25   :  { %v279_v16 = vsel %vm266_vm8, %v175_v11, 0.0  ;;  %vm269_vm12 = vcmp.lt.s32.totalorder %v701_v1, %v268_v9  ;;  %vm270_vm13 = vcmp.lt.s32.totalorder %v759_v56, %v268_v9  ;;  %vm271_vm14 = vcmp.lt.s32.totalorder %v184_v0, %v268_v9 }
  0x26   :  { %v280_v22 = vsel %vm267_vm9, %v176_v15, 0.0  ;;  %v416_v23 = vadd.f32 %v415_v17, %v279_v16  ;;  %vm476_vm15 = vcmp.eq.s32.totalorder %v701_v1, 0 }
  0x28   :  { %v417_v27 = vadd.f32 %v416_v23, %v280_v22 }
  0x2c   :  { %520 = vrot.lane.b32.xlu1 %v519_v34, %s661_s2 }
  0x45   :  { %418 = vadd.xlane.f32.xlu2 %v417_v27 }
  0x76   :  { %v736_v37 = vpop.permute.xlu2 %525 }
  0x77   :  { %v528_v39 = vunpack.i.h.bf16 %v736_v37  ;;  %v527_v40 = vunpack.i.l.bf16 %v736_v37 }
  0x79   :  { %v203_v47 = vsel %vm202_vm5, %v528_v39, %v527_v40 }
  0x7a   :  { %v210_v5 = vsub.f32 %v706_v14, %v203_v47 }
  0x7c   :  { %v214_v14 = vand.u32 2147483647, %v210_v5 }
  0x7e   :  { %v300_v31 = vsel %vm272_vm11, %v214_v14, 0.0 }
  0x7f   :  { %v403_v36 = vadd.f32 %v397_v29, %v300_v31 }
  0x81   :  { %v449_v48 = vrot.slane %v403_v36, 4 }
  0x8b   :  { %v516_v49 = vpop.permute.xlu0 %515 }
  0x8c   :  { %v518_v54 = vunpack.i.h.bf16 %v516_v49  ;;  %v517_v55 = vunpack.i.l.bf16 %v516_v49 }
  0x8e   :  { %v336_v8 = vsel %vm202_vm5, %v518_v54, %v517_v55 }
  0x8f   :  { %v366_v19 = vsub.f32 %v120_v45, %v336_v8 }
  0x91   :  { %v370_v28 = vand.u32 2147483647, %v366_v19 }
  0x96   :  { %v353_v24 = vpop.permute.xlu1 %352  ;;  %v347_v25 = vpop.permute.xlu0 %346 }
  0x97   :  { %v357_v26 = vsel %vm202_vm5, %v353_v24, %v347_v25 }
  0x98   :  { %v358_v30 = vsub.f32 %v120_v45, %v357_v26 }
  0x9a   :  { %v362_v34 = vand.u32 2147483647, %v358_v30 }
  0x9c   :  { %v374_v38 = vsub.f32 %v362_v34, %v370_v28 }
  0x9e   :  { %v521_v41 = vpop.permute.xlu1 %520  ;;  %v381_v2 = vsel %vm202_vm5, %v374_v38, 0.0 }
  0x9f   :  { %v523_v46 = vunpack.i.h.bf16 %v521_v41  ;;  %v522_v47 = vunpack.i.l.bf16 %v521_v41  ;;  %v392_v52 = vperm.slane %v381_v2, 0 }
  0xa1   :  { %v204_v49 = vsel %vm202_vm5, %v523_v46, %v528_v39  ;;  %v205_v45 = vsel %vm202_vm5, %v522_v47, %v523_v46  ;;  %v206_v51 = vsel %vm202_vm5, %v527_v40, %v522_v47  ;;  %v450_v39 = vadd.f32 %v449_v48, %v403_v36 }
  0xa2   :  { %v209_v53 = vsub.f32 %v709_v18, %v204_v49  ;;  %v207_v54 = vsub.f32 %v727_v32, %v206_v51  ;;  %v208_v55 = vsub.f32 %v729_v33, %v205_v45  ;;  %v396_v37 = vsel %vm391_vm10, %v392_v52, 0.0 }
  0xa3   :  { %v451_v3 = vrot.slane %v450_v39, 2 }
  0xa4   :  { %v213_v57 = vand.u32 2147483647, %v209_v53  ;;  %v211_v59 = vand.u32 2147483647, %v207_v54  ;;  %v212_v60 = vand.u32 2147483647, %v208_v55 }
  0xa5   :  { %v452_v7 = vadd.f32 %v451_v3, %v450_v39 }
  0xa6   :  { %v297_v40 = vsel %vm269_vm12, %v211_v59, 0.0  ;;  %v298_v61 = vsel %vm270_vm13, %v212_v60, 0.0  ;;  %v299_v62 = vsel %vm271_vm14, %v213_v57, 0.0 }
  0xa7   :  { %v400_v18 = vadd.f32 %v396_v37, %v297_v40  ;;  %v401_v63 = vadd.f32 %v397_v29, %v298_v61  ;;  %v402_v32 = vadd.f32 %v397_v29, %v299_v62  ;;  %v453_v13 = vrot.slane %v452_v7, 1 }
  0xa9   :  { %v431_v33 = vrot.slane %v400_v18, 4  ;;  %v437_v4 = vrot.slane %v401_v63, 4  ;;  %v443_v5 = vrot.slane %v402_v32, 4  ;;  %v454_v14 = vadd.f32 %v453_v13, %v452_v7 }
  0xab   :  { %v432_v6 = vadd.f32 %v431_v33, %v400_v18  ;;  %v438_v56 = vadd.f32 %v437_v4, %v401_v63  ;;  %v444_v0 = vadd.f32 %v443_v5, %v402_v32  ;;  %v458_v25 = vmul.f32 %v454_v14, %v151_v58 }
  0xad   :  { %v433_v8 = vrot.slane %v432_v6, 2  ;;  %v439_v9 = vrot.slane %v438_v56, 2  ;;  %v445_v10 = vrot.slane %v444_v0, 2  ;;  %v465_v31 = vsel %vm98_vm0, %v458_v25, 0.0 }
  0xaf   :  { %v434_v11 = vadd.f32 %v433_v8, %v432_v6  ;;  %v440_v35 = vadd.f32 %v439_v9, %v438_v56  ;;  %v446_v12 = vadd.f32 %v445_v10, %v444_v0 }
  0xb1   :  { %v435_v15 = vrot.slane %v434_v11, 1  ;;  %v441_v16 = vrot.slane %v440_v35, 1  ;;  %v447_v17 = vrot.slane %v446_v12, 1 }
  0xb3   :  { %v436_v19 = vadd.f32 %v435_v15, %v434_v11  ;;  %v442_v20 = vadd.f32 %v441_v16, %v440_v35  ;;  %v448_v21 = vadd.f32 %v447_v17, %v446_v12 }
  0xb5   :  { %v455_v22 = vmul.f32 %v436_v19, %v148_v43  ;;  %v456_v23 = vmul.f32 %v442_v20, %v149_v44  ;;  %v457_v24 = vmul.f32 %v448_v21, %v150_v50 }
  0xb7   :  { %v460_v26 = vsel %vm98_vm0, %v455_v22, 0.0  ;;  %v461_v27 = vsel %vm98_vm0, %v456_v23, 0.0  ;;  %v463_v29 = vsel %vm98_vm0, %v457_v24, 0.0  ;;  %vm479_vm0 = vcmp.eq.s32.totalorder %v701_v1, 1 }
  0xb8   :  { %v462_v28 = vadd.f32 %v461_v27, %v460_v26  ;;  %v419_v34 = vpop.xlane.xlu2 %418 }
  0xb9   :  { %v420_v44 = vrot.slane %v419_v34, 4 }
  0xba   :  { %v464_v30 = vadd.f32 %v463_v29, %v462_v28 }
  0xbb   :  { %v421_v36 = vadd.f32 %v420_v44, %v419_v34 }
  0xbc   :  { %v466_v43 = vadd.f32 %v465_v31, %v464_v30 }
  0xbd   :  { %v422_v38 = vrot.slane %v421_v36, 2 }
  0xbe   :  { %467 = vadd.xlane.f32.xlu0 %v466_v43 }
  0xbf   :  { %v423_v50 = vadd.f32 %v422_v38, %v421_v36 }
  0xc1   :  { %v424_v41 = vrot.slane %v423_v50, 1 }
  0xc3   :  { %v425_v42 = vadd.f32 %v424_v41, %v423_v50 }
  0xc5   :  { %503 = vpush %v425_v42 }
  0xf6   :  { %s504_s3 = spop %503 }
  0xf7   :  { %v477_v51 = vstv %s504_s3 }
  0xf8   :  { %v478_v53 = vsel %vm476_vm15, %v477_v51, 0.0 }
 0x131   :  { %v468_v58 = vpop.xlane.xlu0 %467 }
 0x132   :  { %v469_v2 = vrot.slane %v468_v58, 4 }
 0x134   :  { %v470_v46 = vadd.f32 %v469_v2, %v468_v58 }
 0x136   :  { %v471_v47 = vrot.slane %v470_v46, 2 }
 0x138   :  { %v472_v48 = vadd.f32 %v471_v47, %v470_v46 }
 0x13a   :  { %v473_v49 = vrot.slane %v472_v48, 1 }
 0x13c   :  { %v474_v45 = vadd.f32 %v473_v49, %v472_v48 }
 0x13e   :  { %505 = vpush %v474_v45 }
 0x16f   :  { %s506_s9 = spop %505 }
 0x170   :  { %v480_v52 = vstv %s506_s9 }
 0x171   :  { %v481_v54 = vsel %vm479_vm0, %v480_v52, 0.0 }
 0x172   :  { %v482_v55 = vadd.f32 %v481_v54, %v478_v53 }
 0x174   :  { %483 = vst [vmem:[#allocation13] sm:$0x1] %v482_v55 }
 0x175   :  { %494 = dma.vmem_to_hbm [thread:$0]  %s490_s8, 16, %s492_s12, [#allocation7]  }
 0x176   :  { %655 = dma.done.wait [#allocation7], 16  }
 0x177   :  { %656 = vsyncadd [#allocation7], 4294967280 }
 0x178   :  { %499 = vsyncpa [#allocation6], 1 }
 0x179   :  { %500 = vsyncpa [#allocation9], 1 }
 0x17a   :  { %501 = vsyncpa [#allocation12], 1 }
 0x17b   :  { %502 = vsyncpa [#allocation7], 1 }

</bundles_post_ra>
